<compile_context>
chip_gen: v5e
topology: v5e:2x2
jax: 0.10.0
libtpu: 0.0.40
codegen_flags: <defaults>
</compile_context>

<pallas_src>
import jax
import jax.numpy as jnp
from jax.experimental import pallas as pl
from jax.experimental.pallas import tpu as pltpu

LANE = 128                                   # lane (minor) dim of a vreg
SUBLANE = 8                                  # sublane dim of a vreg
BLOCK_F32_BYTES = 4 * 1024 * 1024            # per-input per-step f32 working set
ROW_TILE_MAX = (BLOCK_F32_BYTES // (LANE * 4)) // SUBLANE * SUBLANE   # 8192 rows
VMEM_LIMIT_BYTES = 48 * 1024 * 1024          # < 64 MiB physical on v7x


def _num_tensorcores():
    """Best-effort TensorCores-per-chip (2 on v7x, 1 on v5e/v6e). Safe default 1."""
    try:
        info = pltpu.get_tpu_info()
    except Exception:
        return 1
    for attr in ("num_tensorcores", "tensorcore_count", "num_cores_per_chip",
                 "num_cores", "core_count"):
        try:
            v = int(getattr(info, attr))
        except (AttributeError, TypeError, ValueError):
            continue
        if 1 <= v <= 8:
            return min(v, 2)     # only the v7x-style 2-TC megacore is useful today
    return 1


def _make_kernel(row_tile, blocks_per_split, total_blocks, m_rows,
                 ragged_tail, has_dup):
    """Accumulate per-lane partial sums of |p - t| into a resident (8,128) slab."""

    def accum_rows(p_ref, t_ref, o_ref, n_rows):
        # Fold n_rows x 128 |p - t| values into the (8,128) f32 accumulator
        # using pure VPU adds (no cross-lane work in the hot path). n_rows is
        # static, so ragged handling is pure slicing — no iota/compare/select.
        full = (n_rows // SUBLANE) * SUBLANE
        rem = n_rows - full
        if full:
            if full == row_tile:
                p, t = p_ref[...], t_ref[...]
            else:
                p = p_ref[pl.ds(0, full), :]
                t = t_ref[pl.ds(0, full), :]
            d = jnp.abs(p.astype(jnp.float32) - t.astype(jnp.float32))
            o_ref[...] += jnp.sum(
                d.reshape(full // SUBLANE, SUBLANE, LANE), axis=0)
        if rem:
            # Sub-sublane remainder (< 8 rows); tiny, executed at most once.
            d = jnp.abs(p_ref[pl.ds(full, rem), :].astype(jnp.float32)
                        - t_ref[pl.ds(full, rem), :].astype(jnp.float32))
            o_ref[pl.ds(0, 1), :] += jnp.sum(d, axis=0, keepdims=True)

    def kernel(p_ref, t_ref, o_ref):
        i = pl.program_id(1)

        @pl.when(i == 0)
        def _():
            o_ref[...] = jnp.zeros_like(o_ref)

        if not (ragged_tail or has_dup):
            # Common case: every block is full and unique -> zero gating /
            # masking overhead on the hot path (3 VPU ops per data vreg).
            accum_rows(p_ref, t_ref, o_ref, row_tile)
        else:
            c = pl.program_id(0)
            step = c * blocks_per_split + i
            last = total_blocks - 1
            full_upper = last if ragged_tail else total_blocks

            @pl.when(step < full_upper)
            def _():
                accum_rows(p_ref, t_ref, o_ref, row_tile)

            if ragged_tail:
                # Only the genuinely ragged tail block pays for partial rows;
                # garbage rows past m_rows are never read (static slices).
                # Clamped duplicate blocks (step > last) skip compute entirely.
                @pl.when(step == last)
                def _():
                    accum_rows(p_ref, t_ref, o_ref, m_rows - last * row_tile)

    return kernel


def ic_loss(preds_ic, target_ic, weight=1.0):
    """weight * mean(|preds_ic - target_ic|), matching nn.L1Loss() semantics."""
    assert preds_ic.shape == target_ic.shape, "L1Loss requires matching shapes"
    n = int(preds_ic.size)
    assert n > 0

    p_flat = preds_ic.reshape(-1)
    t_flat = target_ic.reshape(-1)

    # Zero-copy fast path whenever n is a multiple of the 128-lane width (the
    # kernel handles ragged row counts itself). Only a sub-128-element
    # remainder forces a small pad.
    pad = (-n) % LANE
    if pad:
        # TODO(synk): for the rare n % 128 != 0 case this still rewrites both
        # flat inputs in HBM; a zero-copy variant needs 1-D blocks / manual DMA.
        p_flat = jnp.concatenate([p_flat, jnp.zeros((pad,), p_flat.dtype)])
        t_flat = jnp.concatenate([t_flat, jnp.zeros((pad,), t_flat.dtype)])

    m_rows = (n + pad) // LANE
    p2d = p_flat.reshape(m_rows, LANE)     # reshape of contiguous data: no copy
    t2d = t_flat.reshape(m_rows, LANE)

    # 8192-row tile (~4 MiB f32 per input per step); single full-array block
    # when the slab is smaller than that.
    row_tile = ROW_TILE_MAX if m_rows > ROW_TILE_MAX else m_rows
    total_blocks = -(-m_rows // row_tile)

    # Split the block range across TensorCores only where they exist (v7x);
    # on single-TC v5e/v6e this stays 1, so no duplicated clamped blocks.
    num_splits = min(_num_tensorcores(), total_blocks)
    blocks_per_split = -(-total_blocks // num_splits)

    ragged_tail = (m_rows % row_tile) != 0
    has_dup = num_splits * blocks_per_split != total_blocks

    if has_dup:
        def in_index_map(c, i):
            # Clamp so DMAs never read past the slab; clamped duplicates skip
            # compute inside the kernel.
            return (jnp.minimum(c * blocks_per_split + i, total_blocks - 1), 0)
    else:
        def in_index_map(c, i):
            return (c * blocks_per_split + i, 0)

    kernel = _make_kernel(row_tile, blocks_per_split, total_blocks, m_rows,
                          ragged_tail, has_dup)

    itemsize = jnp.dtype(p2d.dtype).itemsize
    acc = pl.pallas_call(
        kernel,
        out_shape=jax.ShapeDtypeStruct((num_splits * SUBLANE, LANE), jnp.float32),
        grid_spec=pltpu.PrefetchScalarGridSpec(
            num_scalar_prefetch=0,
            grid=(num_splits, blocks_per_split),
            in_specs=[
                pl.BlockSpec((row_tile, LANE), in_index_map),
                pl.BlockSpec((row_tile, LANE), in_index_map),
            ],
            # Per-split resident (8,128) accumulator across the "arbitrary" axis.
            out_specs=pl.BlockSpec((SUBLANE, LANE), lambda c, i: (c, 0)),
        ),
        compiler_params=pltpu.CompilerParams(
            dimension_semantics=("parallel", "arbitrary"),
            vmem_limit_bytes=VMEM_LIMIT_BYTES,
        ),
        cost_estimate=pl.CostEstimate(
            flops=3 * n, transcendentals=0, bytes_accessed=2 * n * itemsize),
    )(p2d, t2d)

    # Single tiny final reduce (num_splits * 8 * 128 floats) + mean + weight.
    total = jnp.sum(acc)
    return jnp.float32(weight) * total / jnp.float32(n)


if __name__ == "__main__":
    key = jax.random.PRNGKey(0)
    k1, k2, k3, k4, k5, k6 = jax.random.split(key, 6)

    # Small shapes consistent with the module (loss over prediction tensors).
    preds = jax.random.normal(k1, (2, 4, 16, 16), dtype=jnp.float32)
    target = jax.random.normal(k2, (2, 4, 16, 16), dtype=jnp.float32)
    weight = 1.0

    loss = jax.block_until_ready(ic_loss(preds, target, weight=weight))
    ref = weight * jnp.mean(jnp.abs(preds - target))
    assert jnp.allclose(loss, ref, rtol=1e-5, atol=1e-6), (loss, ref)

    # n % 128 == 0 but row count not a multiple of 8: zero-copy path plus the
    # in-kernel sub-sublane remainder handling.
    preds_b = jax.random.normal(k3, (2, 4, 13, 16), dtype=jnp.float32)
    target_b = jax.random.normal(k4, (2, 4, 13, 16), dtype=jnp.float32)
    loss_b = jax.block_until_ready(ic_loss(preds_b, target_b, weight=2.0))
    ref_b = 2.0 * jnp.mean(jnp.abs(preds_b - target_b))
    assert jnp.allclose(loss_b, ref_b, rtol=1e-5, atol=1e-6), (loss_b, ref_b)

    # Fully ragged element count (exercises the sub-128-element pad path).
    preds_r = jax.random.normal(k5, (3, 5, 17, 19), dtype=jnp.float32)
    target_r = jax.random.normal(k6, (3, 5, 17, 19), dtype=jnp.float32)
    loss_r = jax.block_until_ready(ic_loss(preds_r, target_r, weight=0.5))
    ref_r = 0.5 * jnp.mean(jnp.abs(preds_r - target_r))
    assert jnp.allclose(loss_r, ref_r, rtol=1e-5, atol=1e-6), (loss_r, ref_r)

    print("KERNEL_OK")
</pallas_src>

<mosaic_0001>
module attributes {stable_mosaic.version = 11 : i64} {
  func.func @kernel(%arg0: i32, %arg1: i32, %arg2: memref<16x128xf32, #tpu.memory_space<vmem>>, %arg3: memref<16x128xf32, #tpu.memory_space<vmem>>, %arg4: memref<8x128xf32, #tpu.memory_space<vmem>>) attributes {dimension_semantics = [#tpu.dimension_semantics<parallel>, #tpu.dimension_semantics<arbitrary>], iteration_bounds = array<i64: 1, 1>, scalar_prefetch = 0 : i64, scratch_operands = 0 : i64, tpu.core_type = #tpu.core_type<tc>, window_params = [{transform_indices = @transform_0, window_bounds = array<i64: 16, 128>}, {transform_indices = @transform_1, window_bounds = array<i64: 16, 128>}, {transform_indices = @transform_2, window_bounds = array<i64: 8, 128>}]} {
    %c0_i32 = arith.constant 0 : i32
    %0 = arith.cmpi eq, %arg1, %c0_i32 : i32
    %1 = arith.extui %0 : i1 to i32
    %c0_i32_0 = arith.constant 0 : i32
    %2 = arith.cmpi ne, %1, %c0_i32_0 : i32
    scf.if %2 {
      %cst_8 = arith.constant 0.000000e+00 : f32
      %12 = vector.broadcast %cst_8 : f32 to vector<8x128xf32>
      %c0_9 = arith.constant 0 : index
      %c0_10 = arith.constant 0 : index
      %13 = vector.load %arg4[%c0_9, %c0_10] : memref<8x128xf32, #tpu.memory_space<vmem>>, vector<8x128xf32>
      tpu.vector_store %arg4[%c0_9, %c0_10], %12 {strides = array<i32>} : memref<8x128xf32, #tpu.memory_space<vmem>>, vector<8x128xf32>,
    } else {
    }
    %c0 = arith.constant 0 : index
    %c0_1 = arith.constant 0 : index
    %3 = vector.load %arg2[%c0, %c0_1] : memref<16x128xf32, #tpu.memory_space<vmem>>, vector<16x128xf32>
    %c0_2 = arith.constant 0 : index
    %c0_3 = arith.constant 0 : index
    %4 = vector.load %arg3[%c0_2, %c0_3] : memref<16x128xf32, #tpu.memory_space<vmem>>, vector<16x128xf32>
    %5 = arith.subf %3, %4 : vector<16x128xf32>
    %6 = math.absf %5 : vector<16x128xf32>
    %c0_4 = arith.constant 0 : index
    %c0_5 = arith.constant 0 : index
    %7 = vector.load %arg4[%c0_4, %c0_5] : memref<8x128xf32, #tpu.memory_space<vmem>>, vector<8x128xf32>
    %8 = vector.shape_cast %6 : vector<16x128xf32> to vector<2x8x128xf32>
    %cst = arith.constant dense<0.000000e+00> : vector<8x128xf32>
    %9 = vector.multi_reduction <add>, %8, %cst [0] : vector<2x8x128xf32> to vector<8x128xf32>
    %10 = arith.addf %7, %9 : vector<8x128xf32>
    %c0_6 = arith.constant 0 : index
    %c0_7 = arith.constant 0 : index
    %11 = vector.load %arg4[%c0_6, %c0_7] : memref<8x128xf32, #tpu.memory_space<vmem>>, vector<8x128xf32>
    tpu.vector_store %arg4[%c0_6, %c0_7], %10 {strides = array<i32>} : memref<8x128xf32, #tpu.memory_space<vmem>>, vector<8x128xf32>,
    return
  }
  func.func @transform_0(%arg0: i32, %arg1: i32) -> (i32, i32) {
    %c1_i32 = arith.constant 1 : i32
    %0 = arith.muli %arg0, %c1_i32 : i32
    %1 = arith.addi %0, %arg1 : i32
    %c0_i32 = arith.constant 0 : i32
    %c0_i32_0 = arith.constant 0 : i32
    return %1, %c0_i32 : i32, i32
  }
  func.func @transform_1(%arg0: i32, %arg1: i32) -> (i32, i32) {
    %c1_i32 = arith.constant 1 : i32
    %0 = arith.muli %arg0, %c1_i32 : i32
    %1 = arith.addi %0, %arg1 : i32
    %c0_i32 = arith.constant 0 : i32
    %c0_i32_0 = arith.constant 0 : i32
    return %1, %c0_i32 : i32, i32
  }
  func.func @transform_2(%arg0: i32, %arg1: i32) -> (i32, i32) {
    %c0_i32 = arith.constant 0 : i32
    %c0_i32_0 = arith.constant 0 : i32
    return %arg0, %c0_i32 : i32, i32
  }
}

</mosaic_0001>

<bundles_post_ra>
// kernel: tpu_custom_call.1
= control target key start
LH: loop header
LB: loop body
LE: loop exit
PB: predicated region body
PF: predicated region fallthrough
CT: control target
= control target key end

     0   :  { %7 = vsyncpa [#allocation3], 0  ;;  %s204_s0 = inlined_call_operand.hbm [shape: f32[16,128], index: 0, kind: input, shape index: {}]   ;;  %s205_s1 = inlined_call_operand.hbm [shape: f32[16,128], index: 1, kind: input, shape index: {}]   ;;  %s206_s2 = inlined_call_operand.hbm [shape: f32[8,128], index: 2, kind: output, shape index: {}]  }
   0x1   :  { %8 = vsyncpa [#allocation6], 0 }
   0x2   :  { %9 = vsyncpa [#allocation4], 0  ;;  %s18_s11 = sshll.u32 %s204_s0, 4  ;;  %s175_s12 = smov [#allocation2]   ;;  %s19_s11 = int_to_ptr.hbm [resolvable:$true] %s18_s11 }
   0x3   :  { %s20_s13 = sshll.u32 %s175_s12, 4  ;;  %s35_s16 = sshll.u32 %s205_s1, 4  ;;  %s21_s13 = int_to_ptr.vmem [resolvable:$true] %s20_s13  ;;  %s36_s16 = int_to_ptr.hbm [resolvable:$true] %s35_s16 }
   0x4   :  { %s176_s17 = smov 128   ;;  %s177_s18 = smov 8  }
   0x5   :  { %26 = dma.hbm_to_vmem [thread:$0]  %s19_s11, 256, %s21_s13, [#allocation3], %s176_s17, %s176_s17, %s177_s18  }
   0x6   :  { %s178_s19 = smov [#allocation5]  }
   0x7   :  { %s37_s20 = sshll.u32 %s178_s19, 4  ;;  %s38_s20 = int_to_ptr.vmem [resolvable:$true] %s37_s20 }
   0x8   :  { %43 = dma.hbm_to_vmem [thread:$0]  %s36_s16, 256, %s38_s20, [#allocation6], %s176_s17, %s176_s17, %s177_s18  }
   0x9   :  { %169 = dma.done.wait [#allocation3], 256  }
   0xa   :  { %170 = vsyncadd [#allocation3], 4294967040 }
   0xb   :  { %171 = dma.done.wait [#allocation6], 256  }
   0xc   :  { %172 = vsyncadd [#allocation6], 4294967040  ;;  %v61_v0 = vld [vmem:[#allocation2] sm:$0xff]  ;;  %v62_v1 = vld [vmem:[#allocation2 + $0x8] sm:$0xff]  ;;  %s179_s0 = smov [#allocation7]   ;;  %s80_s23 = sshll.u32 %s206_s2, 4  ;;  %s81_s23 = int_to_ptr.hbm [resolvable:$true] %s80_s23 }
   0xd   :  { %v63_v2 = vld [vmem:[#allocation5] sm:$0xff]  ;;  %v64_v3 = vld [vmem:[#allocation5 + $0x8] sm:$0xff]  ;;  %s78_s1 = sshll.u32 %s179_s0, 4  ;;  %s79_s1 = int_to_ptr.vmem [resolvable:$true] %s78_s1 }
   0xe   :  { %v65_v4 = vsub.f32 %v61_v0, %v63_v2  ;;  %v66_v5 = vsub.f32 %v62_v1, %v64_v3 }
  0x10   :  { %v67_v6 = vand.u32 2147483647, %v65_v4  ;;  %v68_v7 = vand.u32 2147483647, %v66_v5 }
  0x12   :  { %v70_v8 = vadd.f32 %v68_v7, %v67_v6 }
  0x14   :  { %72 = vst [vmem:[#allocation7] sm:$0xff] %v70_v8 }
  0x15   :  { %83 = dma.vmem_to_hbm [thread:$0]  %s79_s1, 128, %s81_s23, [#allocation4]  }
  0x16   :  { %173 = dma.done.wait [#allocation4], 128  }
  0x17   :  { %174 = vsyncadd [#allocation4], 4294967168 }
  0x18   :  { %88 = vsyncpa [#allocation3], 1 }
  0x19   :  { %89 = vsyncpa [#allocation6], 1 }
  0x1a   :  { %90 = vsyncpa [#allocation4], 1 }

</bundles_post_ra>
